<compile_context>
chip_gen: v6e
topology: v6e:2x2x1
jax: 0.10.0
libtpu: 0.0.40
codegen_flags: <defaults>
</compile_context>

<pallas_src>
import jax
import jax.numpy as jnp
from jax.experimental import pallas as pl
from jax.experimental.pallas import tpu as pltpu


def _round_up(n, m):
    return ((n + m - 1) // m) * m


def _gmm_loss_kernel(x_ref, wf_ref, t3_ref, out_ref):
    """One batch tile: fused matmul -> [K, TB] distances -> sublane min -> [1, TB]."""
    x = x_ref[...]                                            # [TB, D]
    xf = jnp.concatenate([x * x, x], axis=-1)                 # [TB, 2D]
    # distmat^T = w_fused . xf^T (contraction over the fused 2D axis);
    # batch lands on the lane axis -> lane-dense result and output.
    dist_t = jnp.einsum("kd,bd->kb", wf_ref[...], xf,
                        preferred_element_type=jnp.float32)   # [K, TB]
    dist_t = dist_t + t3_ref[...]                             # + sum_d w^2 c^2 ([K,1] broadcast)
    dist_t = jnp.maximum(dist_t, 0.0)                         # clamp quadratic cancellation
    out_ref[...] = jnp.min(dist_t, axis=0, keepdims=True)     # min over centers (sublane reduce)


def _choose_block_batch(batch, feat_dim, itemsize, *, target_bytes=2 << 20, min_steps=8):
    """Batch tile: big enough to amortize per-grid-step overhead, small enough to
    stay inside every generation's scoped-VMEM budget (v7x: 64 MiB physical) and
    keep >= min_steps grid steps so the megacore split stays busy."""
    row_bytes = _round_up(feat_dim, 128) * itemsize           # lane-padded VMEM row
    tb = max(128, ((target_bytes // row_bytes) // 128) * 128)
    per_core = _round_up(pl.cdiv(batch, min_steps), 128)
    tb = min(tb, max(128, per_core))
    if tb >= batch:
        return batch                                          # single block == full array dims
    return tb


def gmm_loss(x, centers, raw_weights, *, block_batch=None):
    """x: [B, D], centers: [K, D], raw_weights: [K, D] -> dist: [B] (f32)."""
    B, D = x.shape
    K, D2 = centers.shape
    assert D == D2 and raw_weights.shape == (K, D)

    # --- Hoisted per-center constants (exact softmax; computed once, not per tile). ---
    centers = centers.astype(jnp.float32)
    nw = jax.nn.softmax(jnp.logaddexp(raw_weights.astype(jnp.float32), 0.0), axis=-1)  # [K, D]
    w2 = nw * nw                                               # [K, D]
    w2c = w2 * centers                                         # [K, D]
    # ||(x - c_k) w_k||^2 = [x^2 | x] . [w^2 | -2 w^2 c]_k + sum_d w^2 c^2
    w_fused = jnp.concatenate([w2, -2.0 * w2c], axis=-1).astype(x.dtype)   # [K, 2D]
    t3 = jnp.sum(w2c * centers, axis=-1, keepdims=True)        # [K, 1] f32

    tb = block_batch if block_batch is not None else _choose_block_batch(
        B, D, jnp.dtype(x.dtype).itemsize)
    grid = (pl.cdiv(B, tb),)                                   # partial last block is masked

    out = pl.pallas_call(
        _gmm_loss_kernel,
        out_shape=jax.ShapeDtypeStruct((1, B), jnp.float32),
        grid=grid,
        in_specs=[
            pl.BlockSpec((tb, D), lambda i: (i, 0)),           # x: tiled over batch
            pl.BlockSpec((K, 2 * D), lambda i: (0, 0)),        # fused weights: resident
            pl.BlockSpec((K, 1), lambda i: (0, 0)),            # t3: resident
        ],
        out_specs=pl.BlockSpec((1, tb), lambda i: (0, i)),     # lane-dense output block
        compiler_params=pltpu.CompilerParams(
            dimension_semantics=("parallel",),                 # megacore split on v7x
            vmem_limit_bytes=32 * 1024 * 1024,
        ),
    )(x, w_fused, t3)
    return out[0, :]


def gmm_loss_ref(x, centers, raw_weights):
    """Pure-JAX reference mirroring the PyTorch forward (diagonal_nequal / closest)."""
    nw = jax.nn.softmax(jnp.logaddexp(raw_weights, 0.0), axis=-1)   # [K, D]
    diff = (x[:, None, :] - centers[None, :, :]) * nw[None]         # [B, K, D]
    distmat = jnp.sum(diff * diff, axis=-1)                         # [B, K]
    return jnp.min(distmat, axis=-1)                                # [B]


if __name__ == "__main__":
    feat_dim = 32
    batch = 8

    key = jax.random.PRNGKey(0)
    k_x, k_c1, k_c2, k_c3, k_w3, k_x4, k_c4 = jax.random.split(key, 7)
    x = jax.random.normal(k_x, (batch, feat_dim), jnp.float32)

    RTOL, ATOL = 5e-4, 1e-5

    # Case 1: module default num_center=1, raw_weights = 1/feat_dim.
    c1 = jax.random.normal(k_c1, (1, feat_dim), jnp.float32)
    w1 = jnp.ones((1, feat_dim), jnp.float32) / feat_dim
    d1 = jax.block_until_ready(gmm_loss(x, c1, w1))
    assert d1.shape == (batch,)
    assert jnp.allclose(d1, gmm_loss_ref(x, c1, w1), rtol=RTOL, atol=ATOL)

    # Case 2: num_center=4 (module-style init).
    c2 = jax.random.normal(k_c2, (4, feat_dim), jnp.float32)
    w2_ = jnp.ones((4, feat_dim), jnp.float32) / feat_dim
    d2 = jax.block_until_ready(gmm_loss(x, c2, w2_))
    assert jnp.allclose(d2, gmm_loss_ref(x, c2, w2_), rtol=RTOL, atol=ATOL)

    # Case 3: num_center=16, perturbed weights.
    c3 = jax.random.normal(k_c3, (16, feat_dim), jnp.float32)
    w3 = jax.random.normal(k_w3, (16, feat_dim), jnp.float32) * 0.1 + 1.0 / feat_dim
    d3 = jax.block_until_ready(gmm_loss(x, c3, w3))
    assert jnp.allclose(d3, gmm_loss_ref(x, c3, w3), rtol=RTOL, atol=ATOL)

    # Case 4: multi-step grid with a partial (masked) last block, no jnp.pad.
    x4 = jax.random.normal(k_x4, (300, feat_dim), jnp.float32)
    c4 = jax.random.normal(k_c4, (8, feat_dim), jnp.float32)
    w4 = jnp.ones((8, feat_dim), jnp.float32) / feat_dim
    d4 = jax.block_until_ready(gmm_loss(x4, c4, w4, block_batch=128))
    assert d4.shape == (300,)
    assert jnp.allclose(d4, gmm_loss_ref(x4, c4, w4), rtol=RTOL, atol=ATOL)

    print("KERNEL_OK")
</pallas_src>

<mosaic_0001>
module attributes {stable_mosaic.version = 11 : i64} {
  func.func @_gmm_loss_kernel(%arg0: i32, %arg1: memref<8x32xf32, #tpu.memory_space<vmem>>, %arg2: memref<1x64xf32, #tpu.memory_space<vmem>>, %arg3: memref<1x1xf32, #tpu.memory_space<vmem>>, %arg4: memref<1x8xf32, #tpu.memory_space<vmem>>) attributes {dimension_semantics = [#tpu.dimension_semantics<parallel>], iteration_bounds = array<i64: 1>, scalar_prefetch = 0 : i64, scratch_operands = 0 : i64, tpu.core_type = #tpu.core_type<tc>, window_params = [{transform_indices = @transform_0, window_bounds = array<i64: 8, 32>}, {pipeline_mode = #tpu.pipeline_mode<synchronous>, transform_indices = @transform_1, window_bounds = array<i64: 1, 64>}, {pipeline_mode = #tpu.pipeline_mode<synchronous>, transform_indices = @transform_2, window_bounds = array<i64: 1, 1>}, {transform_indices = @transform_3, window_bounds = array<i64: 1, 8>}]} {
    %c0 = arith.constant 0 : index
    %c0_0 = arith.constant 0 : index
    %0 = vector.load %arg1[%c0, %c0_0] : memref<8x32xf32, #tpu.memory_space<vmem>>, vector<8x32xf32>
    %1 = arith.mulf %0, %0 : vector<8x32xf32>
    %2 = tpu.concatenate %1, %0 in 1 : vector<8x32xf32>, vector<8x32xf32> -> vector<8x64xf32>
    %c0_1 = arith.constant 0 : index
    %c0_2 = arith.constant 0 : index
    %3 = vector.load %arg2[%c0_1, %c0_2] : memref<1x64xf32, #tpu.memory_space<vmem>>, vector<1x64xf32>
    "tpu.trace_start"() <{level = 10 : i32, message = "kd,bd->kb"}> : () -> ()
    %cst = arith.constant dense<0.000000e+00> : vector<1x8xf32>
    %4 = tpu.matmul %3, %2, %cst {dimension_numbers = #tpu.dot_dimension_numbers<[1], [1], [0], [0], [0, 0, 1, 0], [], []>} : vector<1x64xf32>, vector<8x64xf32>, vector<1x8xf32> -> vector<1x8xf32>
    "tpu.trace_stop"() : () -> ()
    %c0_3 = arith.constant 0 : index
    %c0_4 = arith.constant 0 : index
    %5 = vector.load %arg3[%c0_3, %c0_4] : memref<1x1xf32, #tpu.memory_space<vmem>>, vector<1x1xf32>
    %6 = vector.broadcast %5 : vector<1x1xf32> to vector<1x8xf32>
    %7 = arith.addf %4, %6 : vector<1x8xf32>
    %cst_5 = arith.constant 0.000000e+00 : f32
    %8 = vector.broadcast %cst_5 : f32 to vector<1x8xf32>
    %9 = arith.maximumf %7, %8 : vector<1x8xf32>
    %cst_6 = arith.constant dense<0x7F800000> : vector<8xf32>
    %10 = vector.multi_reduction <minimumf>, %9, %cst_6 [0] : vector<1x8xf32> to vector<8xf32>
    %11 = vector.shape_cast %10 : vector<8xf32> to vector<1x8xf32>
    %c0_7 = arith.constant 0 : index
    %c0_8 = arith.constant 0 : index
    %12 = vector.load %arg4[%c0_7, %c0_8] : memref<1x8xf32, #tpu.memory_space<vmem>>, vector<1x8xf32>
    tpu.vector_store %arg4[%c0_7, %c0_8], %11 {strides = array<i32>} : memref<1x8xf32, #tpu.memory_space<vmem>>, vector<1x8xf32>,
    return
  }
  func.func @transform_0(%arg0: i32) -> (i32, i32) {
    %c0_i32 = arith.constant 0 : i32
    %c0_i32_0 = arith.constant 0 : i32
    return %arg0, %c0_i32 : i32, i32
  }
  func.func @transform_1(%arg0: i32) -> (i32, i32) {
    %c0_i32 = arith.constant 0 : i32
    %c0_i32_0 = arith.constant 0 : i32
    %c0_i32_1 = arith.constant 0 : i32
    return %c0_i32, %c0_i32_0 : i32, i32
  }
  func.func @transform_2(%arg0: i32) -> (i32, i32) {
    %c0_i32 = arith.constant 0 : i32
    %c0_i32_0 = arith.constant 0 : i32
    %c0_i32_1 = arith.constant 0 : i32
    return %c0_i32, %c0_i32_0 : i32, i32
  }
  func.func @transform_3(%arg0: i32) -> (i32, i32) {
    %c0_i32 = arith.constant 0 : i32
    %c0_i32_0 = arith.constant 0 : i32
    return %c0_i32, %arg0 : i32, i32
  }
}

</mosaic_0001>

<bundles_post_ra>
// kernel: tpu_custom_call.1
= control target key start
LH: loop header
LB: loop body
LE: loop exit
PB: predicated region body
PF: predicated region fallthrough
CT: control target
= control target key end

     0   :  { %s241_s0 = inlined_call_operand.hbm [shape: f32[8,32], index: 0, kind: input, shape index: {}]   ;;  %s242_s1 = inlined_call_operand.vmem [shape: f32[1,64], index: 1, kind: input, shape index: {}]   ;;  %s243_s2 = inlined_call_operand.<no memory space> [shape: f32[1,1], index: 2, kind: input, shape index: {}]   ;;  %s244_s3 = inlined_call_operand.hbm [shape: f32[1,8], index: 3, kind: output, shape index: {}]  }
   0x1   :  { %v8_v0 = vstv %s243_s2 }
   0x2   :  { %9 = vst [vmem:[#allocation2] sm:$0x1] %v8_v0 }
   0x3   :  { %10 = vsyncpa [#allocation4], 0 }
   0x4   :  { %11 = vsyncpa [#allocation5], 0  ;;  %s203_s14 = smov [#allocation3]  }
   0x5   :  { %s18_s15 = sshll.u32 %s203_s14, 4  ;;  %s19_s15 = int_to_ptr.vmem [resolvable:$true] %s18_s15 }
   0x6   :  { %s167_s16 = scalar_lea.vmem %s19_s15, 128  ;;  %p172_p1 = scmp.lt.s32.totalorder %s19_s15, %s19_s15 }
   0x7   :  { %p168_p0 = scmp.ne.s32.totalorder %s19_s15, %s167_s16  ;;  %p173_p2 = scmp.lt.s32.totalorder %s167_s16, %s167_s16 }
   0x9   :  { %p174_p3 = por %p173_p2, %p172_p1 }
   0xb   :  { %p175_p4 = pnand %p174_p3, %p168_p0 }
   0xd   :  { %178 = shalt.err (!%p175_p4)
}
   0xe   :  { %21 = dma.hbm_to_vmem [thread:$0]  %s241_s0, 128, %s19_s15, [#allocation4]  }
   0xf   :  { %199 = dma.done.wait [#allocation4], 128  }
  0x10   :  { %200 = vsyncadd [#allocation4], 4294967168  ;;  %v204_v1 = vmov 0.0   ;;  %vm205_vm0 = vmmov 0   ;;  %v206_v2 = vmov 0   ;;  %v29_v3 = vld [vmem:[#allocation3] sm:$0xff]  ;;  %v44_v9 = vlaneseq }
  0x11   :  { %147 = vmatprep.subr.mxu0 %v204_v1  ;;  %149 = vmatprep.mubr.msk.f32.mxu0 %vm205_vm0, %v204_v1  ;;  %s207_s2 = smov 32   ;;  %v38_v4 = vld [vmem:[#allocation2] sm:$0x1]  ;;  %v30_v5 = vmul.f32 %v29_v3, %v29_v3  ;;  %vm35_vm1 = vcmask 261120   ;;  %vm48_vm2 = vcmask 523264   ;;  %s208_s20 = smov [#allocation6]  }
  0x12   :  { %158 = vset.pattern.permute.xlu0 %v206_v2  ;;  %v37_v8 = vld [vmem:[%s242_s1] sm:$0x1]  ;;  %v45_v10 = vshrl.u32 %v44_v9, 7  ;;  %s134_s21 = sshll.u32 %s208_s20, 4  ;;  %vm126_vm3 = vcmask 57344   ;;  %s135_s21 = int_to_ptr.vmem [resolvable:$true] %s134_s21 }
  0x13   :  { %32 = vrot.lane.b32.xlu0 %v29_v3, %s207_s2  ;;  %s179_s22 = scalar_lea.vmem %s135_s21, 16  ;;  %s183_s23 = scalar_lea.vmem %s135_s21, 32 }
  0x14   :  { %v46_v11 = vsub.s32 0, %v45_v10  ;;  %p180_p5 = scmp.ne.s32.totalorder %s135_s21, %s179_s22  ;;  %p184_p6 = scmp.lt.s32.totalorder %s135_s21, %s135_s21 }
  0x15   :  { %p185_p7 = scmp.lt.s32.totalorder %s183_s23, %s179_s22 }
  0x17   :  { %41 = vperm.xlu0 %158, %v38_v4   ;;  %p186_p8 = por %p185_p7, %p184_p6 }
  0x19   :  { %p187_p9 = pnand %p186_p8, %p180_p5 }
  0x85   :  { %v33_v6 = vpop.permute.xlu0 %32 }
  0x86   :  { %v36_v7 = vsel %vm35_vm1, %v30_v5, %v33_v6 }
  0x87   :  { %148 = vmatpush3.xpose.msk.msra.mxu0 %vm48_vm2, %v36_v7 }
  0x8a   :  { %150 = vmatmul.mubr.msk.f32.vlgmr.msra.gmra.mxu0 %vm48_vm2, %v37_v8 }
  0x92   :  { %v42_v12 = vpop.permute.xlu0 %41 }
  0x93   :  { %v47_v13 = vrot.slane %v42_v12, %v46_v11 }
 0x14a   :  { %v121_v14 = vpop.f32.mrf.mxu0 }
 0x14b   :  { %v122_v15 = vadd.f32 %v121_v14, %v47_v13 }
 0x14c   :  { %v151_v16 = vpop.f32.mrf.mxu0 }
 0x14d   :  { %v125_v17 = vmax.f32 %v122_v15, 0.0 }
 0x14f   :  { %127 = vst.msk [vmem:[#allocation6] sm:$0x1] %vm126_vm3, %v125_v17 }
 0x150   :  { %190 = shalt.err (!%p187_p9)
}
 0x151   :  { %137 = dma.vmem_to_hbm [thread:$0]  %s135_s21, 16, %s244_s3, [#allocation5]  }
 0x152   :  { %201 = dma.done.wait [#allocation5], 16  }
 0x153   :  { %202 = vsyncadd [#allocation5], 4294967280 }
 0x154   :  { %141 = vsyncpa [#allocation4], 1 }
 0x155   :  { %142 = vsyncpa [#allocation5], 1 }

</bundles_post_ra>
